<compile_context>
chip_gen: v5e
topology: v5e:2x2
jax: 0.10.0
libtpu: 0.0.40
codegen_flags: <defaults>
</compile_context>

<pallas_src>
from functools import partial

import jax
import jax.numpy as jnp
from jax.experimental import pallas as pl
from jax.experimental.pallas import tpu as pltpu


# ----------------------------------------------------------------------------
# helpers
# ----------------------------------------------------------------------------
def _round_up(x, m):
    return ((x + m - 1) // m) * m


def _pad2(a, rows, cols):
    return jnp.pad(a, ((0, rows - a.shape[0]), (0, cols - a.shape[1])))


def _divisor_tile(n_pad, cap, min_blocks=1):
    """Largest multiple-of-128 divisor of n_pad that is <= cap and leaves at
    least `min_blocks` grid blocks.  Falls back to 128."""
    m = n_pad // 128
    best = 128
    for d in range(1, m + 1):
        if m % d == 0:
            t = 128 * d
            if t <= cap and (n_pad // t) >= min_blocks:
                best = max(best, t)
    return best


def build_norm_adjacency(edge_index, num_nodes, padded_nodes, dtype=jnp.bfloat16):
    """Dense D^{-1/2}(A+I)D^{-1/2} (PyG gcn_norm), zero-padded to padded_nodes.

    Output is produced directly in the kernel dtype (normalize + cast fuse in
    XLA, so no separate f32 normalized matrix is materialized).  Padded
    rows/cols have zero degree -> dinv = 0 -> stay inert through aggregation.
    """
    loops = jnp.arange(num_nodes, dtype=edge_index.dtype)
    src = jnp.concatenate([edge_index[0], loops])
    dst = jnp.concatenate([edge_index[1], loops])
    # A_hat[i, j] = #edges j -> i (plus self loop); aggregation is src -> dst.
    a_hat = jnp.zeros((padded_nodes, padded_nodes), jnp.float32).at[dst, src].add(1.0)
    deg = a_hat.sum(axis=1)
    dinv = jnp.where(deg > 0.0, jax.lax.rsqrt(deg), 0.0)
    return (dinv[:, None] * a_hat * dinv[None, :]).astype(dtype)


# ----------------------------------------------------------------------------
# kernel 1: fused fc + conv0 feature transform
#   xw0 = (x @ fc_w + fc_b) @ W0
# ----------------------------------------------------------------------------
def _transform_kernel(x_ref, fcw_ref, fcb_ref, w0_ref, o_ref):
    h0 = jnp.dot(x_ref[...], fcw_ref[...], preferred_element_type=jnp.float32)
    h0 = h0 + fcb_ref[...]
    xw0 = jnp.dot(h0.astype(jnp.bfloat16), w0_ref[...],
                  preferred_element_type=jnp.float32)
    o_ref[...] = xw0.astype(o_ref.dtype)


def _transform(x_p, fcw, fcb, w0, tile_i):
    n_pad, din = x_p.shape
    hp = fcw.shape[1]
    return pl.pallas_call(
        _transform_kernel,
        out_shape=jax.ShapeDtypeStruct((n_pad, hp), jnp.bfloat16),
        grid_spec=pltpu.PrefetchScalarGridSpec(
            num_scalar_prefetch=0,
            grid=(n_pad // tile_i,),
            in_specs=[
                pl.BlockSpec((tile_i, din), lambda i: (i, 0)),
                pl.BlockSpec((din, hp), lambda i: (0, 0)),
                pl.BlockSpec((1, hp), lambda i: (0, 0)),
                pl.BlockSpec((hp, hp), lambda i: (0, 0)),
            ],
            out_specs=pl.BlockSpec((tile_i, hp), lambda i: (i, 0)),
        ),
        compiler_params=pltpu.CompilerParams(dimension_semantics=("parallel",)),
    )(x_p, fcw, fcb, w0)


# ----------------------------------------------------------------------------
# streaming aggregation (large graphs): tiled A, VMEM-resident xw slab
#   o = relu(sum_k A[i,k] @ xw[k] + b) @ W_next + b_next
# ----------------------------------------------------------------------------
def _agg_stream_kernel(a_ref, xw_ref, b_ref, wn_ref, wnb_ref, o_ref, acc_ref,
                       *, tile_k):
    k = pl.program_id(1)

    @pl.when(k == 0)
    def _():
        acc_ref[...] = jnp.zeros_like(acc_ref)

    # xw slab is fully VMEM-resident (constant-index BlockSpec); slice the
    # current reduction block in-kernel instead of re-streaming it from HBM.
    start = pl.multiple_of(k * tile_k, 128)
    xw_blk = xw_ref[pl.ds(start, tile_k), :]
    acc_ref[...] += jnp.dot(a_ref[...], xw_blk,
                            preferred_element_type=jnp.float32)

    @pl.when(k == pl.num_programs(1) - 1)
    def _():
        h = jnp.maximum(acc_ref[...] + b_ref[...], 0.0)          # f32 epilogue
        p = jnp.dot(h.astype(jnp.bfloat16), wn_ref[...],
                    preferred_element_type=jnp.float32)
        o_ref[...] = (p + wnb_ref[...]).astype(o_ref.dtype)


def _aggregate_stream(a_norm, xw, b, wn, wnb, tile_i, tile_k, out_dtype,
                      vmem_limit):
    n_pad = a_norm.shape[0]
    hp = xw.shape[1]
    hw = wn.shape[1]
    return pl.pallas_call(
        partial(_agg_stream_kernel, tile_k=tile_k),
        out_shape=jax.ShapeDtypeStruct((n_pad, hw), out_dtype),
        grid_spec=pltpu.PrefetchScalarGridSpec(
            num_scalar_prefetch=0,
            grid=(n_pad // tile_i, n_pad // tile_k),
            in_specs=[
                pl.BlockSpec((tile_i, tile_k), lambda i, k: (i, k)),  # A tile
                pl.BlockSpec((n_pad, hp), lambda i, k: (0, 0)),       # xw (resident)
                pl.BlockSpec((1, hp), lambda i, k: (0, 0)),           # conv bias
                pl.BlockSpec((hp, hw), lambda i, k: (0, 0)),          # epilogue W
                pl.BlockSpec((1, hw), lambda i, k: (0, 0)),           # epilogue b
            ],
            out_specs=pl.BlockSpec((tile_i, hw), lambda i, k: (i, 0)),
            scratch_shapes=[pltpu.VMEM((tile_i, hp), jnp.float32)],
        ),
        compiler_params=pltpu.CompilerParams(
            dimension_semantics=("parallel", "arbitrary"),
            vmem_limit_bytes=vmem_limit),
    )(a_norm, xw, b, wn, wnb)


# ----------------------------------------------------------------------------
# fused aggregation (small/medium graphs): A resident in VMEM, both GCN
# aggregation passes + head projection in a single pallas_call
#   p = relu(A @ relu(A @ xw0 + b0) @ W1 + b1) @ W_heads + b_heads
# ----------------------------------------------------------------------------
def _agg_fused_kernel(a_ref, xw0_ref, b0_ref, w1_ref, b1_ref, wh_ref, bh_ref,
                      o_ref):
    a = a_ref[...]
    h1 = jnp.maximum(
        jnp.dot(a, xw0_ref[...], preferred_element_type=jnp.float32)
        + b0_ref[...], 0.0)
    xw1 = jnp.dot(h1.astype(jnp.bfloat16), w1_ref[...],
                  preferred_element_type=jnp.float32)
    h2 = jnp.maximum(
        jnp.dot(a, xw1.astype(jnp.bfloat16), preferred_element_type=jnp.float32)
        + b1_ref[...], 0.0)
    p = jnp.dot(h2.astype(jnp.bfloat16), wh_ref[...],
                preferred_element_type=jnp.float32)
    o_ref[...] = (p + bh_ref[...]).astype(o_ref.dtype)


def _aggregate_fused(a_norm, xw0, b0, w1, b1, wh, bh, vmem_limit):
    n_pad = a_norm.shape[0]
    hp = xw0.shape[1]
    hd = wh.shape[1]
    return pl.pallas_call(
        _agg_fused_kernel,
        out_shape=jax.ShapeDtypeStruct((n_pad, hd), jnp.float32),
        grid_spec=pltpu.PrefetchScalarGridSpec(
            num_scalar_prefetch=0,
            grid=(1,),
            in_specs=[
                pl.BlockSpec((n_pad, n_pad), lambda i: (0, 0)),  # A (resident)
                pl.BlockSpec((n_pad, hp), lambda i: (0, 0)),
                pl.BlockSpec((1, hp), lambda i: (0, 0)),
                pl.BlockSpec((hp, hp), lambda i: (0, 0)),
                pl.BlockSpec((1, hp), lambda i: (0, 0)),
                pl.BlockSpec((hp, hd), lambda i: (0, 0)),
                pl.BlockSpec((1, hd), lambda i: (0, 0)),
            ],
            out_specs=pl.BlockSpec((n_pad, hd), lambda i: (0, 0)),
        ),
        compiler_params=pltpu.CompilerParams(
            dimension_semantics=("arbitrary",),
            vmem_limit_bytes=vmem_limit),
    )(a_norm, xw0, b0, w1, b1, wh, bh)


# ----------------------------------------------------------------------------
# parameters + forward
# ----------------------------------------------------------------------------
def init_params(key, in_dim, hidden_dim):
    ks = jax.random.split(key, 10)
    s = 0.1
    return {
        "fc_w": s * jax.random.normal(ks[0], (in_dim, hidden_dim), jnp.float32),
        "fc_b": s * jax.random.normal(ks[1], (hidden_dim,), jnp.float32),
        "conv0_w": s * jax.random.normal(ks[2], (hidden_dim, hidden_dim), jnp.float32),
        "conv0_b": s * jax.random.normal(ks[3], (hidden_dim,), jnp.float32),
        "conv1_w": s * jax.random.normal(ks[4], (hidden_dim, hidden_dim), jnp.float32),
        "conv1_b": s * jax.random.normal(ks[5], (hidden_dim,), jnp.float32),
        "node_w": s * jax.random.normal(ks[6], (hidden_dim, 1), jnp.float32),
        "node_b": s * jax.random.normal(ks[7], (1,), jnp.float32),
        "edge_w": s * jax.random.normal(ks[8], (2 * hidden_dim, 1), jnp.float32),
        "edge_b": s * jax.random.normal(ks[9], (1,), jnp.float32),
    }


def gcn_masker_forward(params, x, edge_index, *, force_streaming=False):
    n, in_dim = x.shape
    hidden = params["fc_w"].shape[1]

    # Pad only to 128-lane multiples (never up to the tile size).
    n_pad = _round_up(max(n, 8), 128)
    din = _round_up(in_dim, 128)
    hp = _round_up(hidden, 128)
    hd = 128  # head slab lanes: [node | edge_top | edge_bot | zeros...]

    # Decoupled tiles for the streaming path; keep >= 2 row blocks (megacore).
    tile_i = _divisor_tile(n_pad, 512, min_blocks=2 if n_pad >= 256 else 1)
    tile_k = _divisor_tile(n_pad, 2048)

    # --- zero-pad operands (padded rows/cols stay inert through the math) ----
    x_p = _pad2(x, n_pad, din).astype(jnp.bfloat16)
    fcw = _pad2(params["fc_w"], din, hp).astype(jnp.bfloat16)
    fcb = jnp.pad(params["fc_b"], (0, hp - hidden)).reshape(1, hp).astype(jnp.float32)
    w0 = _pad2(params["conv0_w"], hp, hp).astype(jnp.bfloat16)
    b0 = jnp.pad(params["conv0_b"], (0, hp - hidden)).reshape(1, hp).astype(jnp.float32)
    w1 = _pad2(params["conv1_w"], hp, hp).astype(jnp.bfloat16)
    b1 = jnp.pad(params["conv1_b"], (0, hp - hidden)).reshape(1, hp).astype(jnp.float32)

    # head slab: col0 = node head (bias folded), col1 = edge w_top, col2 = edge w_bot
    w_top = params["edge_w"][:hidden]
    w_bot = params["edge_w"][hidden:]
    w_heads = jnp.zeros((hp, hd), jnp.float32)
    w_heads = w_heads.at[:hidden, 0:1].set(params["node_w"])
    w_heads = w_heads.at[:hidden, 1:2].set(w_top)
    w_heads = w_heads.at[:hidden, 2:3].set(w_bot)
    w_heads = w_heads.astype(jnp.bfloat16)
    b_heads = jnp.zeros((1, hd), jnp.float32).at[0, 0].set(params["node_b"][0])
    zeros_b = jnp.zeros((1, hp), jnp.float32)  # conv0->conv1 transform has no bias

    a_norm = build_norm_adjacency(edge_index, n, n_pad)  # bf16 directly

    # kernel 1: xw0 = (x @ fc_w + fc_b) @ W0           (dropout = identity, eval)
    xw0 = _transform(x_p, fcw, fcb, w0, tile_i)

    # choose aggregation path: A resident in VMEM (1 HBM read of A total) when
    # it fits a conservative cross-generation budget, else streamed tiles.
    a_bytes = n_pad * n_pad * 2
    act_bytes = n_pad * hp * 4
    fused_est = 2 * a_bytes + 6 * act_bytes + (4 << 20)
    use_fused = (not force_streaming) and fused_est <= (44 << 20)

    if use_fused:
        vmem_limit = int(min(60 << 20, max(32 << 20, fused_est)))
        p = _aggregate_fused(a_norm, xw0, b0, w1, b1, w_heads, b_heads, vmem_limit)
    else:
        stream_est = (2 * tile_i * tile_k * 2      # A tile, double-buffered
                      + 2 * n_pad * hp * 2         # resident xw slab (+buffer)
                      + tile_i * hp * 4            # f32 accumulator
                      + 2 * tile_i * hd * 4        # output tile, double-buffered
                      + (4 << 20))                 # weights + headroom
        vmem_limit = int(min(60 << 20, max(32 << 20, stream_est)))
        # kernel 2: xw1 = relu(A @ xw0 + b0) @ W1
        xw1 = _aggregate_stream(a_norm, xw0, b0, w1, zeros_b,
                                tile_i, tile_k, jnp.bfloat16, vmem_limit)
        # kernel 3: p = relu(A @ xw1 + b1) @ W_heads + b_heads
        p = _aggregate_stream(a_norm, xw1, b1, w_heads, b_heads,
                              tile_i, tile_k, jnp.float32, vmem_limit)

    # node_score = sigmoid(node_score_fn(h))
    node_score = jax.nn.sigmoid(p[:n, 0:1])
    # edge_score = sigmoid([h[row], h[col]] @ edge_w + edge_b)
    #            = sigmoid(h[row] @ w_top + h[col] @ w_bot + edge_b)
    row, col = edge_index[0], edge_index[1]
    edge_logit = p[row, 1] + p[col, 2] + params["edge_b"][0]
    edge_score = jax.nn.sigmoid(edge_logit)[:, None]
    return edge_score, node_score


# ----------------------------------------------------------------------------
# pure-JAX f32 reference (tolerance check of the bf16 kernel path)
# ----------------------------------------------------------------------------
def gcn_masker_reference(params, x, edge_index):
    n = x.shape[0]
    a = build_norm_adjacency(edge_index, n, n, dtype=jnp.float32)
    h = x @ params["fc_w"] + params["fc_b"]
    for i in range(2):
        h = jnp.maximum(a @ (h @ params[f"conv{i}_w"]) + params[f"conv{i}_b"], 0.0)
    node = jax.nn.sigmoid(h @ params["node_w"] + params["node_b"])
    row, col = edge_index[0], edge_index[1]
    ef = jnp.concatenate([h[row], h[col]], axis=-1)
    edge = jax.nn.sigmoid(ef @ params["edge_w"] + params["edge_b"])
    return edge, node


# ----------------------------------------------------------------------------
if __name__ == "__main__":
    N, IN_DIM, HIDDEN, E = 16, 8, 32, 24

    key = jax.random.PRNGKey(0)
    kx, ke, kp = jax.random.split(key, 3)

    x = jax.random.normal(kx, (N, IN_DIM), jnp.float32)
    edge_index = jax.random.randint(ke, (2, E), 0, N, dtype=jnp.int32)
    params = init_params(kp, IN_DIM, HIDDEN)

    fwd = jax.jit(gcn_masker_forward, static_argnames=("force_streaming",))

    # fused resident-A path (default for small/medium graphs)
    edge_f, node_f = fwd(params, x, edge_index)
    # streaming tiled path (used for large graphs) -- exercised here for coverage
    edge_s, node_s = fwd(params, x, edge_index, force_streaming=True)
    jax.block_until_ready((edge_f, node_f, edge_s, node_s))

    ref_edge, ref_node = gcn_masker_reference(params, x, edge_index)

    for edge_score, node_score in ((edge_f, node_f), (edge_s, node_s)):
        assert edge_score.shape == (E, 1) and node_score.shape == (N, 1)
        assert bool(jnp.all((node_score >= 0) & (node_score <= 1)))
        assert bool(jnp.all((edge_score >= 0) & (edge_score <= 1)))
        assert bool(jnp.allclose(node_score, ref_node, atol=2e-2, rtol=2e-2))
        assert bool(jnp.allclose(edge_score, ref_edge, atol=2e-2, rtol=2e-2))
    print("KERNEL_OK")
</pallas_src>

<mosaic_0001>
module attributes {stable_mosaic.version = 11 : i64} {
  func.func @_transform_kernel(%arg0: i32, %arg1: memref<128x128xbf16, #tpu.memory_space<vmem>>, %arg2: memref<128x128xbf16, #tpu.memory_space<vmem>>, %arg3: memref<1x128xf32, #tpu.memory_space<vmem>>, %arg4: memref<128x128xbf16, #tpu.memory_space<vmem>>, %arg5: memref<128x128xbf16, #tpu.memory_space<vmem>>) attributes {dimension_semantics = [#tpu.dimension_semantics<parallel>], iteration_bounds = array<i64: 1>, scalar_prefetch = 0 : i64, scratch_operands = 0 : i64, tpu.core_type = #tpu.core_type<tc>, window_params = [{transform_indices = @transform_0, window_bounds = array<i64: 128, 128>}, {pipeline_mode = #tpu.pipeline_mode<synchronous>, transform_indices = @transform_1, window_bounds = array<i64: 128, 128>}, {pipeline_mode = #tpu.pipeline_mode<synchronous>, transform_indices = @transform_2, window_bounds = array<i64: 1, 128>}, {pipeline_mode = #tpu.pipeline_mode<synchronous>, transform_indices = @transform_3, window_bounds = array<i64: 128, 128>}, {transform_indices = @transform_4, window_bounds = array<i64: 128, 128>}]} {
    %c0 = arith.constant 0 : index
    %c0_0 = arith.constant 0 : index
    %0 = vector.load %arg1[%c0, %c0_0] : memref<128x128xbf16, #tpu.memory_space<vmem>>, vector<128x128xbf16>
    %c0_1 = arith.constant 0 : index
    %c0_2 = arith.constant 0 : index
    %1 = vector.load %arg2[%c0_1, %c0_2] : memref<128x128xbf16, #tpu.memory_space<vmem>>, vector<128x128xbf16>
    %cst = arith.constant dense<0.000000e+00> : vector<128x128xf32>
    %2 = tpu.matmul %0, %1, %cst {dimension_numbers = #tpu.dot_dimension_numbers<[1], [0], [0], [1], [0, 0, 1, 1], [], []>} : vector<128x128xbf16>, vector<128x128xbf16>, vector<128x128xf32> -> vector<128x128xf32>
    %c0_3 = arith.constant 0 : index
    %c0_4 = arith.constant 0 : index
    %3 = vector.load %arg3[%c0_3, %c0_4] : memref<1x128xf32, #tpu.memory_space<vmem>>, vector<1x128xf32>
    %4 = vector.broadcast %3 : vector<1x128xf32> to vector<128x128xf32>
    %5 = arith.addf %2, %4 : vector<128x128xf32>
    %6 = arith.truncf %5 : vector<128x128xf32> to vector<128x128xbf16>
    %c0_5 = arith.constant 0 : index
    %c0_6 = arith.constant 0 : index
    %7 = vector.load %arg4[%c0_5, %c0_6] : memref<128x128xbf16, #tpu.memory_space<vmem>>, vector<128x128xbf16>
    %cst_7 = arith.constant dense<0.000000e+00> : vector<128x128xf32>
    %8 = tpu.matmul %6, %7, %cst_7 {dimension_numbers = #tpu.dot_dimension_numbers<[1], [0], [0], [1], [0, 0, 1, 1], [], []>} : vector<128x128xbf16>, vector<128x128xbf16>, vector<128x128xf32> -> vector<128x128xf32>
    %9 = arith.truncf %8 : vector<128x128xf32> to vector<128x128xbf16>
    %c0_8 = arith.constant 0 : index
    %c0_9 = arith.constant 0 : index
    %10 = vector.load %arg5[%c0_8, %c0_9] : memref<128x128xbf16, #tpu.memory_space<vmem>>, vector<128x128xbf16>
    tpu.vector_store %arg5[%c0_8, %c0_9], %9 {strides = array<i32>} : memref<128x128xbf16, #tpu.memory_space<vmem>>, vector<128x128xbf16>,
    return
  }
  func.func @transform_0(%arg0: i32) -> (i32, i32) {
    %c0_i32 = arith.constant 0 : i32
    %c0_i32_0 = arith.constant 0 : i32
    return %arg0, %c0_i32 : i32, i32
  }
  func.func @transform_1(%arg0: i32) -> (i32, i32) {
    %c0_i32 = arith.constant 0 : i32
    %c0_i32_0 = arith.constant 0 : i32
    %c0_i32_1 = arith.constant 0 : i32
    return %c0_i32, %c0_i32_0 : i32, i32
  }
  func.func @transform_2(%arg0: i32) -> (i32, i32) {
    %c0_i32 = arith.constant 0 : i32
    %c0_i32_0 = arith.constant 0 : i32
    %c0_i32_1 = arith.constant 0 : i32
    return %c0_i32, %c0_i32_0 : i32, i32
  }
  func.func @transform_3(%arg0: i32) -> (i32, i32) {
    %c0_i32 = arith.constant 0 : i32
    %c0_i32_0 = arith.constant 0 : i32
    %c0_i32_1 = arith.constant 0 : i32
    return %c0_i32, %c0_i32_0 : i32, i32
  }
  func.func @transform_4(%arg0: i32) -> (i32, i32) {
    %c0_i32 = arith.constant 0 : i32
    %c0_i32_0 = arith.constant 0 : i32
    return %arg0, %c0_i32 : i32, i32
  }
}

module attributes {stable_mosaic.version = 11 : i64} {
  func.func @_agg_fused_kernel(%arg0: i32, %arg1: memref<128x128xbf16, #tpu.memory_space<vmem>>, %arg2: memref<128x128xbf16, #tpu.memory_space<vmem>>, %arg3: memref<1x128xf32, #tpu.memory_space<vmem>>, %arg4: memref<128x128xbf16, #tpu.memory_space<vmem>>, %arg5: memref<1x128xf32, #tpu.memory_space<vmem>>, %arg6: memref<128x128xbf16, #tpu.memory_space<vmem>>, %arg7: memref<1x128xf32, #tpu.memory_space<vmem>>, %arg8: memref<128x128xf32, #tpu.memory_space<vmem>>) attributes {dimension_semantics = [#tpu.dimension_semantics<arbitrary>], iteration_bounds = array<i64: 1>, scalar_prefetch = 0 : i64, scratch_operands = 0 : i64, tpu.core_type = #tpu.core_type<tc>, window_params = [{pipeline_mode = #tpu.pipeline_mode<synchronous>, transform_indices = @transform_0, window_bounds = array<i64: 128, 128>}, {pipeline_mode = #tpu.pipeline_mode<synchronous>, transform_indices = @transform_1, window_bounds = array<i64: 128, 128>}, {pipeline_mode = #tpu.pipeline_mode<synchronous>, transform_indices = @transform_2, window_bounds = array<i64: 1, 128>}, {pipeline_mode = #tpu.pipeline_mode<synchronous>, transform_indices = @transform_3, window_bounds = array<i64: 128, 128>}, {pipeline_mode = #tpu.pipeline_mode<synchronous>, transform_indices = @transform_4, window_bounds = array<i64: 1, 128>}, {pipeline_mode = #tpu.pipeline_mode<synchronous>, transform_indices = @transform_5, window_bounds = array<i64: 128, 128>}, {pipeline_mode = #tpu.pipeline_mode<synchronous>, transform_indices = @transform_6, window_bounds = array<i64: 1, 128>}, {pipeline_mode = #tpu.pipeline_mode<synchronous>, transform_indices = @transform_7, window_bounds = array<i64: 128, 128>}]} {
    %c0 = arith.constant 0 : index
    %c0_0 = arith.constant 0 : index
    %0 = vector.load %arg1[%c0, %c0_0] : memref<128x128xbf16, #tpu.memory_space<vmem>>, vector<128x128xbf16>
    %c0_1 = arith.constant 0 : index
    %c0_2 = arith.constant 0 : index
    %1 = vector.load %arg2[%c0_1, %c0_2] : memref<128x128xbf16, #tpu.memory_space<vmem>>, vector<128x128xbf16>
    %cst = arith.constant dense<0.000000e+00> : vector<128x128xf32>
    %2 = tpu.matmul %0, %1, %cst {dimension_numbers = #tpu.dot_dimension_numbers<[1], [0], [0], [1], [0, 0, 1, 1], [], []>} : vector<128x128xbf16>, vector<128x128xbf16>, vector<128x128xf32> -> vector<128x128xf32>
    %c0_3 = arith.constant 0 : index
    %c0_4 = arith.constant 0 : index
    %3 = vector.load %arg3[%c0_3, %c0_4] : memref<1x128xf32, #tpu.memory_space<vmem>>, vector<1x128xf32>
    %4 = vector.broadcast %3 : vector<1x128xf32> to vector<128x128xf32>
    %5 = arith.addf %2, %4 : vector<128x128xf32>
    %cst_5 = arith.constant 0.000000e+00 : f32
    %6 = vector.broadcast %cst_5 : f32 to vector<128x128xf32>
    %7 = arith.maximumf %5, %6 : vector<128x128xf32>
    %8 = arith.truncf %7 : vector<128x128xf32> to vector<128x128xbf16>
    %c0_6 = arith.constant 0 : index
    %c0_7 = arith.constant 0 : index
    %9 = vector.load %arg4[%c0_6, %c0_7] : memref<128x128xbf16, #tpu.memory_space<vmem>>, vector<128x128xbf16>
    %cst_8 = arith.constant dense<0.000000e+00> : vector<128x128xf32>
    %10 = tpu.matmul %8, %9, %cst_8 {dimension_numbers = #tpu.dot_dimension_numbers<[1], [0], [0], [1], [0, 0, 1, 1], [], []>} : vector<128x128xbf16>, vector<128x128xbf16>, vector<128x128xf32> -> vector<128x128xf32>
    %11 = arith.truncf %10 : vector<128x128xf32> to vector<128x128xbf16>
    %cst_9 = arith.constant dense<0.000000e+00> : vector<128x128xf32>
    %12 = tpu.matmul %0, %11, %cst_9 {dimension_numbers = #tpu.dot_dimension_numbers<[1], [0], [0], [1], [0, 0, 1, 1], [], []>} : vector<128x128xbf16>, vector<128x128xbf16>, vector<128x128xf32> -> vector<128x128xf32>
    %c0_10 = arith.constant 0 : index
    %c0_11 = arith.constant 0 : index
    %13 = vector.load %arg5[%c0_10, %c0_11] : memref<1x128xf32, #tpu.memory_space<vmem>>, vector<1x128xf32>
    %14 = vector.broadcast %13 : vector<1x128xf32> to vector<128x128xf32>
    %15 = arith.addf %12, %14 : vector<128x128xf32>
    %cst_12 = arith.constant 0.000000e+00 : f32
    %16 = vector.broadcast %cst_12 : f32 to vector<128x128xf32>
    %17 = arith.maximumf %15, %16 : vector<128x128xf32>
    %18 = arith.truncf %17 : vector<128x128xf32> to vector<128x128xbf16>
    %c0_13 = arith.constant 0 : index
    %c0_14 = arith.constant 0 : index
    %19 = vector.load %arg6[%c0_13, %c0_14] : memref<128x128xbf16, #tpu.memory_space<vmem>>, vector<128x128xbf16>
    %cst_15 = arith.constant dense<0.000000e+00> : vector<128x128xf32>
    %20 = tpu.matmul %18, %19, %cst_15 {dimension_numbers = #tpu.dot_dimension_numbers<[1], [0], [0], [1], [0, 0, 1, 1], [], []>} : vector<128x128xbf16>, vector<128x128xbf16>, vector<128x128xf32> -> vector<128x128xf32>
    %c0_16 = arith.constant 0 : index
    %c0_17 = arith.constant 0 : index
    %21 = vector.load %arg7[%c0_16, %c0_17] : memref<1x128xf32, #tpu.memory_space<vmem>>, vector<1x128xf32>
    %22 = vector.broadcast %21 : vector<1x128xf32> to vector<128x128xf32>
    %23 = arith.addf %20, %22 : vector<128x128xf32>
    %c0_18 = arith.constant 0 : index
    %c0_19 = arith.constant 0 : index
    %24 = vector.load %arg8[%c0_18, %c0_19] : memref<128x128xf32, #tpu.memory_space<vmem>>, vector<128x128xf32>
    tpu.vector_store %arg8[%c0_18, %c0_19], %23 {strides = array<i32>} : memref<128x128xf32, #tpu.memory_space<vmem>>, vector<128x128xf32>,
    return
  }
  func.func @transform_0(%arg0: i32) -> (i32, i32) {
    %c0_i32 = arith.constant 0 : i32
    %c0_i32_0 = arith.constant 0 : i32
    %c0_i32_1 = arith.constant 0 : i32
    return %c0_i32, %c0_i32_0 : i32, i32
  }
  func.func @transform_1(%arg0: i32) -> (i32, i32) {
    %c0_i32 = arith.constant 0 : i32
    %c0_i32_0 = arith.constant 0 : i32
    %c0_i32_1 = arith.constant 0 : i32
    return %c0_i32, %c0_i32_0 : i32, i32
  }
  func.func @transform_2(%arg0: i32) -> (i32, i32) {
    %c0_i32 = arith.constant 0 : i32
    %c0_i32_0 = arith.constant 0 : i32
    %c0_i32_1 = arith.constant 0 : i32
    return %c0_i32, %c0_i32_0 : i32, i32
  }
  func.func @transform_3(%arg0: i32) -> (i32, i32) {
    %c0_i32 = arith.constant 0 : i32
    %c0_i32_0 = arith.constant 0 : i32
    %c0_i32_1 = arith.constant 0 : i32
    return %c0_i32, %c0_i32_0 : i32, i32
  }
  func.func @transform_4(%arg0: i32) -> (i32, i32) {
    %c0_i32 = arith.constant 0 : i32
    %c0_i32_0 = arith.constant 0 : i32
    %c0_i32_1 = arith.constant 0 : i32
    return %c0_i32, %c0_i32_0 : i32, i32
  }
  func.func @transform_5(%arg0: i32) -> (i32, i32) {
    %c0_i32 = arith.constant 0 : i32
    %c0_i32_0 = arith.constant 0 : i32
    %c0_i32_1 = arith.constant 0 : i32
    return %c0_i32, %c0_i32_0 : i32, i32
  }
  func.func @transform_6(%arg0: i32) -> (i32, i32) {
    %c0_i32 = arith.constant 0 : i32
    %c0_i32_0 = arith.constant 0 : i32
    %c0_i32_1 = arith.constant 0 : i32
    return %c0_i32, %c0_i32_0 : i32, i32
  }
  func.func @transform_7(%arg0: i32) -> (i32, i32) {
    %c0_i32 = arith.constant 0 : i32
    %c0_i32_0 = arith.constant 0 : i32
    %c0_i32_1 = arith.constant 0 : i32
    return %c0_i32, %c0_i32_0 : i32, i32
  }
}

</mosaic_0001>

<bundles_post_ra>
// kernel: gcn_masker_forward.2
= control target key start
LH: loop header
LB: loop body
LE: loop exit
PB: predicated region body
PF: predicated region fallthrough
CT: control target
= control target key end

     0   :  { %s663_s1 = inlined_call_operand.vmem [shape: bf16[128,128], index: 1, kind: input, shape index: {}]   ;;  %s664_s2 = inlined_call_operand.vmem [shape: f32[1,128], index: 2, kind: input, shape index: {}]   ;;  %s665_s0 = inlined_call_operand.vmem [shape: bf16[128,128], index: 0, kind: input, shape index: {}]   ;;  %s666_s3 = inlined_call_operand.vmem [shape: bf16[128,128], index: 3, kind: input, shape index: {}]   ;;  %s667_s4 = inlined_call_operand.vmem [shape: bf16[128,128], index: 4, kind: output, shape index: {}]  }
   0x1   :  { %v466_v0 = vld [vmem:[%s663_s1 + $0x38] sm:$0xff]  ;;  %v465_v1 = vld [vmem:[%s663_s1 + $0x30] sm:$0xff]  ;;  %v464_v2 = vld [vmem:[%s663_s1 + $0x28] sm:$0xff] }
   0x2   :  { %149 = vmatpush.bf16.msra.mxu0 %v466_v0  ;;  %522 = vmatpush.bf16.msra.mxu2 %v466_v0  ;;  %v463_v3 = vld [vmem:[%s663_s1 + $0x20] sm:$0xff]  ;;  %v462_v4 = vld [vmem:[%s663_s1 + $0x18] sm:$0xff]  ;;  %v461_v5 = vld [vmem:[%s663_s1 + $0x10] sm:$0xff] }
   0x3   :  { %v460_v6 = vld [vmem:[%s663_s1 + $0x8] sm:$0xff]  ;;  %v459_v7 = vld [vmem:[%s663_s1] sm:$0xff]  ;;  %v474_v12 = vld [vmem:[%s666_s3 + $0x38] sm:$0xff] }
   0x4   :  { %v451_v8 = vld [vmem:[%s665_s0] sm:$0xff]  ;;  %v452_v10 = vld [vmem:[%s665_s0 + $0x8] sm:$0xff]  ;;  %270 = vmatpush.bf16.msra.mxu1 %v474_v12  ;;  %v473_v13 = vld [vmem:[%s666_s3 + $0x30] sm:$0xff]  ;;  %530 = vmatpush.bf16.msra.mxu3 %v474_v12 }
   0x5   :  { %v455_v9 = vld [vmem:[%s665_s0 + $0x20] sm:$0xff]  ;;  %v456_v11 = vld [vmem:[%s665_s0 + $0x28] sm:$0xff]  ;;  %v453_v16 = vld [vmem:[%s665_s0 + $0x10] sm:$0xff] }
   0x6   :  { %150 = vmatpush.bf16.msra.mxu0 %v465_v1  ;;  %523 = vmatpush.bf16.msra.mxu2 %v465_v1  ;;  %v472_v14 = vld [vmem:[%s666_s3 + $0x28] sm:$0xff]  ;;  %v471_v15 = vld [vmem:[%s666_s3 + $0x20] sm:$0xff]  ;;  %v457_v17 = vld [vmem:[%s665_s0 + $0x30] sm:$0xff] }
   0x7   :  { %v470_v18 = vld [vmem:[%s666_s3 + $0x18] sm:$0xff]  ;;  %v469_v21 = vld [vmem:[%s666_s3 + $0x10] sm:$0xff]  ;;  %v468_v22 = vld [vmem:[%s666_s3 + $0x8] sm:$0xff] }
   0x8   :  { %271 = vmatpush.bf16.msra.mxu1 %v473_v13  ;;  %531 = vmatpush.bf16.msra.mxu3 %v473_v13  ;;  %v454_v19 = vld [vmem:[%s665_s0 + $0x18] sm:$0xff]  ;;  %v467_v23 = vld [vmem:[%s666_s3] sm:$0xff] }
   0x9   :  { %v458_v20 = vld [vmem:[%s665_s0 + $0x38] sm:$0xff]  ;;  %v538_v25 = vld [vmem:[%s664_s2] ss:$0 sm:$0xff] }
   0xa   :  { %151 = vmatpush.bf16.msra.mxu0 %v464_v2  ;;  %524 = vmatpush.bf16.msra.mxu2 %v464_v2 }
   0xc   :  { %272 = vmatpush.bf16.msra.mxu1 %v472_v14  ;;  %532 = vmatpush.bf16.msra.mxu3 %v472_v14 }
   0xe   :  { %152 = vmatpush.bf16.msra.mxu0 %v463_v3  ;;  %525 = vmatpush.bf16.msra.mxu2 %v463_v3 }
  0x10   :  { %273 = vmatpush.bf16.msra.mxu1 %v471_v15  ;;  %533 = vmatpush.bf16.msra.mxu3 %v471_v15 }
  0x12   :  { %153 = vmatpush.bf16.msra.mxu0 %v462_v4  ;;  %526 = vmatpush.bf16.msra.mxu2 %v462_v4 }
  0x14   :  { %274 = vmatpush.bf16.msra.mxu1 %v470_v18  ;;  %534 = vmatpush.bf16.msra.mxu3 %v470_v18 }
  0x16   :  { %154 = vmatpush.bf16.msra.mxu0 %v461_v5  ;;  %527 = vmatpush.bf16.msra.mxu2 %v461_v5 }
  0x18   :  { %275 = vmatpush.bf16.msra.mxu1 %v469_v21  ;;  %535 = vmatpush.bf16.msra.mxu3 %v469_v21 }
  0x1a   :  { %155 = vmatpush.bf16.msra.mxu0 %v460_v6  ;;  %528 = vmatpush.bf16.msra.mxu2 %v460_v6 }
  0x1c   :  { %276 = vmatpush.bf16.msra.mxu1 %v468_v22  ;;  %536 = vmatpush.bf16.msra.mxu3 %v468_v22 }
  0x1e   :  { %156 = vmatpush.bf16.msra.mxu0 %v459_v7  ;;  %529 = vmatpush.bf16.msra.mxu2 %v459_v7 }
  0x20   :  { %277 = vmatpush.bf16.msra.mxu1 %v467_v23  ;;  %537 = vmatpush.bf16.msra.mxu3 %v467_v23 }
  0x21   :  { %157 = vmatmul.bf16.vlgmr.msra.gmra.mxu0 %v451_v8  ;;  %177 = vmatmul.bf16.vlgmr.msra.gmra.mxu2 %v455_v9 }
  0x31   :  { %162 = vmatmul.bf16.gmra.mxu0 %v452_v10  ;;  %182 = vmatmul.bf16.gmra.mxu2 %v456_v11 }
  0x41   :  { %167 = vmatmul.bf16.gmra.mxu0 %v453_v16  ;;  %187 = vmatmul.bf16.gmra.mxu2 %v457_v17 }
  0x51   :  { %172 = vmatmul.bf16.gmra.mxu0 %v454_v19  ;;  %192 = vmatmul.bf16.gmra.mxu2 %v458_v20 }
  0x9e   :  { %v158_v24 = vpop.f32.mrf.mxu0 }
  0x9f   :  { %v159_v27 = vadd.f32 %v538_v25, %v158_v24 }
  0xa4   :  { %v178_v26 = vpop.f32.mrf.mxu2 }
  0xa5   :  { %v179_v32 = vadd.f32 %v538_v25, %v178_v26 }
  0xa6   :  { %v160_v28 = vpop.f32.mrf.mxu0 }
  0xa7   :  { %v161_v29 = vadd.f32 %v538_v25, %v160_v28 }
  0xa9   :  { %v198_v30 = vpack.c.bf16 %v161_v29, %v159_v27 }
  0xab   :  { %278 = vmatmul.bf16.vlgmr.msra.gmra.mxu1 %v198_v30 }
  0xac   :  { %v180_v31 = vpop.f32.mrf.mxu2 }
  0xad   :  { %v181_v33 = vadd.f32 %v538_v25, %v180_v31 }
  0xae   :  { %v163_v34 = vpop.f32.mrf.mxu0 }
  0xaf   :  { %v202_v35 = vpack.c.bf16 %v181_v33, %v179_v32  ;;  %v164_v37 = vadd.f32 %v538_v25, %v163_v34 }
  0xb1   :  { %298 = vmatmul.bf16.vlgmr.msra.gmra.mxu3 %v202_v35 }
  0xb4   :  { %v183_v36 = vpop.f32.mrf.mxu2 }
  0xb5   :  { %v184_v42 = vadd.f32 %v538_v25, %v183_v36 }
  0xb6   :  { %v165_v38 = vpop.f32.mrf.mxu0 }
  0xb7   :  { %v166_v39 = vadd.f32 %v538_v25, %v165_v38 }
  0xb9   :  { %v199_v40 = vpack.c.bf16 %v166_v39, %v164_v37 }
  0xbb   :  { %283 = vmatmul.bf16.gmra.mxu1 %v199_v40 }
  0xbc   :  { %v185_v41 = vpop.f32.mrf.mxu2 }
  0xbd   :  { %v186_v43 = vadd.f32 %v538_v25, %v185_v41 }
  0xbe   :  { %v168_v44 = vpop.f32.mrf.mxu0 }
  0xbf   :  { %v203_v45 = vpack.c.bf16 %v186_v43, %v184_v42  ;;  %v169_v47 = vadd.f32 %v538_v25, %v168_v44 }
  0xc1   :  { %303 = vmatmul.bf16.gmra.mxu3 %v203_v45 }
  0xc4   :  { %v188_v46 = vpop.f32.mrf.mxu2 }
  0xc5   :  { %v189_v52 = vadd.f32 %v538_v25, %v188_v46 }
  0xc6   :  { %v170_v48 = vpop.f32.mrf.mxu0 }
  0xc7   :  { %v171_v49 = vadd.f32 %v538_v25, %v170_v48 }
  0xc9   :  { %v200_v50 = vpack.c.bf16 %v171_v49, %v169_v47 }
  0xcb   :  { %288 = vmatmul.bf16.gmra.mxu1 %v200_v50 }
  0xcc   :  { %v190_v51 = vpop.f32.mrf.mxu2 }
  0xcd   :  { %v191_v53 = vadd.f32 %v538_v25, %v190_v51 }
  0xce   :  { %v173_v54 = vpop.f32.mrf.mxu0 }
  0xcf   :  { %v204_v55 = vpack.c.bf16 %v191_v53, %v189_v52  ;;  %v174_v57 = vadd.f32 %v538_v25, %v173_v54 }
  0xd1   :  { %308 = vmatmul.bf16.gmra.mxu3 %v204_v55 }
  0xd4   :  { %v193_v56 = vpop.f32.mrf.mxu2 }
  0xd5   :  { %v194_v62 = vadd.f32 %v538_v25, %v193_v56 }
  0xd6   :  { %v175_v58 = vpop.f32.mrf.mxu0 }
  0xd7   :  { %v176_v59 = vadd.f32 %v538_v25, %v175_v58 }
  0xd9   :  { %v201_v60 = vpack.c.bf16 %v176_v59, %v174_v57 }
  0xdb   :  { %293 = vmatmul.bf16.gmra.mxu1 %v201_v60 }
  0xdc   :  { %v195_v61 = vpop.f32.mrf.mxu2 }
  0xdd   :  { %v196_v63 = vadd.f32 %v538_v25, %v195_v61 }
  0xdf   :  { %v205_v0 = vpack.c.bf16 %v196_v63, %v194_v62 }
  0xe1   :  { %313 = vmatmul.bf16.gmra.mxu3 %v205_v0 }
 0x128   :  { %v279_v1 = vpop.f32.mrf.mxu1 }
 0x130   :  { %v281_v2 = vpop.f32.mrf.mxu1 }
 0x131   :  { %v478_v3 = vpack.c.bf16 %v281_v2, %v279_v1 }
 0x133   :  { %479 = vst [vmem:[%s667_s4] sm:$0xff] %v478_v3  }
 0x134   :  { %v299_v4 = vpop.f32.mrf.mxu3 }
 0x138   :  { %v284_v5 = vpop.f32.mrf.mxu1 }
 0x13c   :  { %v301_v6 = vpop.f32.mrf.mxu3 }
 0x13d   :  { %v498_v7 = vpack.c.bf16 %v301_v6, %v299_v4 }
 0x13f   :  { %518 = vst [vmem:[%s667_s4 + $0x20] sm:$0xff] %v498_v7  }
 0x140   :  { %v286_v8 = vpop.f32.mrf.mxu1 }
 0x141   :  { %v483_v9 = vpack.c.bf16 %v286_v8, %v284_v5 }
 0x143   :  { %515 = vst [vmem:[%s667_s4 + $0x8] sm:$0xff] %v483_v9  }
 0x144   :  { %v304_v10 = vpop.f32.mrf.mxu3 }
 0x148   :  { %v289_v11 = vpop.f32.mrf.mxu1 }
 0x14c   :  { %v306_v12 = vpop.f32.mrf.mxu3 }
 0x14d   :  { %v503_v13 = vpack.c.bf16 %v306_v12, %v304_v10 }
 0x14f   :  { %519 = vst [vmem:[%s667_s4 + $0x28] sm:$0xff] %v503_v13  }
 0x150   :  { %v291_v14 = vpop.f32.mrf.mxu1 }
 0x151   :  { %v488_v15 = vpack.c.bf16 %v291_v14, %v289_v11 }
 0x153   :  { %516 = vst [vmem:[%s667_s4 + $0x10] sm:$0xff] %v488_v15  }
 0x154   :  { %v309_v16 = vpop.f32.mrf.mxu3 }
 0x158   :  { %v294_v17 = vpop.f32.mrf.mxu1 }
 0x15c   :  { %v311_v18 = vpop.f32.mrf.mxu3 }
 0x15d   :  { %v508_v19 = vpack.c.bf16 %v311_v18, %v309_v16 }
 0x15f   :  { %520 = vst [vmem:[%s667_s4 + $0x30] sm:$0xff] %v508_v19  }
 0x160   :  { %v296_v20 = vpop.f32.mrf.mxu1 }
 0x161   :  { %v493_v21 = vpack.c.bf16 %v296_v20, %v294_v17 }
 0x163   :  { %517 = vst [vmem:[%s667_s4 + $0x18] sm:$0xff] %v493_v21  }
 0x164   :  { %v314_v22 = vpop.f32.mrf.mxu3 }
 0x16c   :  { %v316_v23 = vpop.f32.mrf.mxu3 }
 0x16d   :  { %v513_v24 = vpack.c.bf16 %v316_v23, %v314_v22 }
 0x16f   :  { %521 = vst [vmem:[%s667_s4 + $0x38] sm:$0xff] %v513_v24  }

// kernel: gcn_masker_forward.3
= control target key start
LH: loop header
LB: loop body
LE: loop exit
PB: predicated region body
PF: predicated region fallthrough
CT: control target
= control target key end

     0   :  { %s954_s1 = inlined_call_operand.vmem [shape: bf16[128,128], index: 1, kind: input, shape index: {}]   ;;  %s955_s2 = inlined_call_operand.vmem [shape: f32[1,128], index: 2, kind: input, shape index: {}]   ;;  %s956_s0 = inlined_call_operand.vmem [shape: bf16[128,128], index: 0, kind: input, shape index: {}]   ;;  %s957_s3 = inlined_call_operand.vmem [shape: bf16[128,128], index: 3, kind: input, shape index: {}]   ;;  %s958_s4 = inlined_call_operand.vmem [shape: f32[1,128], index: 4, kind: input, shape index: {}]   ;;  %s959_s5 = inlined_call_operand.vmem [shape: bf16[128,128], index: 5, kind: input, shape index: {}]   ;;  %s960_s6 = inlined_call_operand.vmem [shape: f32[1,128], index: 6, kind: input, shape index: {}]   ;;  %s961_s7 = inlined_call_operand.vmem [shape: f32[128,128], index: 7, kind: output, shape index: {}]  }
   0x1   :  { %v709_v0 = vld [vmem:[%s954_s1 + $0x38] sm:$0xff]  ;;  %v708_v1 = vld [vmem:[%s954_s1 + $0x30] sm:$0xff]  ;;  %v707_v2 = vld [vmem:[%s954_s1 + $0x28] sm:$0xff] }
   0x2   :  { %158 = vmatpush.bf16.msra.mxu0 %v709_v0  ;;  %v706_v3 = vld [vmem:[%s954_s1 + $0x20] sm:$0xff]  ;;  %v705_v4 = vld [vmem:[%s954_s1 + $0x18] sm:$0xff]  ;;  %v704_v5 = vld [vmem:[%s954_s1 + $0x10] sm:$0xff] }
   0x3   :  { %v703_v6 = vld [vmem:[%s954_s1 + $0x8] sm:$0xff]  ;;  %v702_v7 = vld [vmem:[%s954_s1] sm:$0xff]  ;;  %v808_v10 = vld [vmem:[%s956_s0 + $0x10] sm:$0xff] }
   0x4   :  { %v796_v8 = vld [vmem:[%s956_s0] sm:$0xff]  ;;  %v802_v9 = vld [vmem:[%s956_s0 + $0x8] sm:$0xff]  ;;  %v814_v11 = vld [vmem:[%s956_s0 + $0x18] sm:$0xff] }
   0x5   :  { %v820_v12 = vld [vmem:[%s956_s0 + $0x20] sm:$0xff]  ;;  %v717_v13 = vld [vmem:[%s957_s3 + $0x38] sm:$0xff]  ;;  %v829_v14 = vld [vmem:[%s956_s0 + $0x28] sm:$0xff] }
   0x6   :  { %159 = vmatpush.bf16.msra.mxu0 %v708_v1  ;;  %295 = vmatpush.bf16.msra.mxu1 %v717_v13  ;;  %v716_v15 = vld [vmem:[%s957_s3 + $0x30] sm:$0xff]  ;;  %v715_v16 = vld [vmem:[%s957_s3 + $0x28] sm:$0xff]  ;;  %v714_v17 = vld [vmem:[%s957_s3 + $0x20] sm:$0xff] }
   0x7   :  { %v713_v18 = vld [vmem:[%s957_s3 + $0x18] sm:$0xff]  ;;  %v847_v19 = vld [vmem:[%s956_s0 + $0x30] sm:$0xff]  ;;  %v711_v21 = vld [vmem:[%s957_s3 + $0x8] sm:$0xff] }
   0x8   :  { %v712_v20 = vld [vmem:[%s957_s3 + $0x10] sm:$0xff]  ;;  %v710_v22 = vld [vmem:[%s957_s3] sm:$0xff]  ;;  %v862_v23 = vld [vmem:[%s956_s0 + $0x38] sm:$0xff] }
   0x9   :  { %v726_v25 = vld [vmem:[%s955_s2] ss:$0 sm:$0xff] }
   0xa   :  { %160 = vmatpush.bf16.msra.mxu0 %v707_v2  ;;  %296 = vmatpush.bf16.msra.mxu1 %v716_v15 }
   0xe   :  { %161 = vmatpush.bf16.msra.mxu0 %v706_v3  ;;  %297 = vmatpush.bf16.msra.mxu1 %v715_v16 }
  0x12   :  { %162 = vmatpush.bf16.msra.mxu0 %v705_v4  ;;  %298 = vmatpush.bf16.msra.mxu1 %v714_v17 }
  0x16   :  { %163 = vmatpush.bf16.msra.mxu0 %v704_v5  ;;  %299 = vmatpush.bf16.msra.mxu1 %v713_v18 }
  0x1a   :  { %164 = vmatpush.bf16.msra.mxu0 %v703_v6  ;;  %300 = vmatpush.bf16.msra.mxu1 %v712_v20 }
  0x1e   :  { %165 = vmatpush.bf16.msra.mxu0 %v702_v7  ;;  %301 = vmatpush.bf16.msra.mxu1 %v711_v21 }
  0x21   :  { %166 = vmatmul.bf16.vlgmr.msra.gmra.mxu0 %v796_v8 }
  0x22   :  { %302 = vmatpush.bf16.msra.mxu1 %v710_v22 }
  0x31   :  { %171 = vmatmul.bf16.gmra.mxu0 %v802_v9 }
  0x41   :  { %176 = vmatmul.bf16.gmra.mxu0 %v808_v10 }
  0x51   :  { %181 = vmatmul.bf16.gmra.mxu0 %v814_v11 }
  0x61   :  { %186 = vmatmul.bf16.gmra.mxu0 %v820_v12 }
  0x71   :  { %191 = vmatmul.bf16.gmra.mxu0 %v829_v14 }
  0x81   :  { %196 = vmatmul.bf16.gmra.mxu0 %v847_v19 }
  0x91   :  { %201 = vmatmul.bf16.gmra.mxu0 %v862_v23 }
  0x9e   :  { %v167_v24 = vpop.f32.mrf.mxu0 }
  0x9f   :  { %v168_v26 = vadd.f32 %v726_v25, %v167_v24 }
  0xa1   :  { %v207_v29 = vmax.f32 %v168_v26, 0.0 }
  0xa6   :  { %v169_v27 = vpop.f32.mrf.mxu0 }
  0xa7   :  { %v170_v28 = vadd.f32 %v726_v25, %v169_v27 }
  0xa9   :  { %v208_v30 = vmax.f32 %v170_v28, 0.0 }
  0xab   :  { %v223_v31 = vpack.c.bf16 %v208_v30, %v207_v29 }
  0xad   :  { %303 = vmatmul.bf16.vlgmr.msra.gmra.mxu1 %v223_v31 }
  0xae   :  { %v172_v32 = vpop.f32.mrf.mxu0 }
  0xaf   :  { %v173_v33 = vadd.f32 %v726_v25, %v172_v32 }
  0xb1   :  { %v209_v36 = vmax.f32 %v173_v33, 0.0 }
  0xb6   :  { %v174_v34 = vpop.f32.mrf.mxu0 }
  0xb7   :  { %v175_v35 = vadd.f32 %v726_v25, %v174_v34 }
  0xb9   :  { %v210_v37 = vmax.f32 %v175_v35, 0.0 }
  0xbb   :  { %v224_v38 = vpack.c.bf16 %v210_v37, %v209_v36 }
  0xbd   :  { %308 = vmatmul.bf16.gmra.mxu1 %v224_v38 }
  0xbe   :  { %v177_v39 = vpop.f32.mrf.mxu0 }
  0xbf   :  { %v178_v40 = vadd.f32 %v726_v25, %v177_v39 }
  0xc1   :  { %v211_v43 = vmax.f32 %v178_v40, 0.0 }
  0xc6   :  { %v179_v41 = vpop.f32.mrf.mxu0 }
  0xc7   :  { %v180_v42 = vadd.f32 %v726_v25, %v179_v41 }
  0xc9   :  { %v212_v44 = vmax.f32 %v180_v42, 0.0 }
  0xcb   :  { %v225_v45 = vpack.c.bf16 %v212_v44, %v211_v43 }
  0xcd   :  { %313 = vmatmul.bf16.gmra.mxu1 %v225_v45 }
  0xce   :  { %v182_v46 = vpop.f32.mrf.mxu0 }
  0xcf   :  { %v183_v47 = vadd.f32 %v726_v25, %v182_v46 }
  0xd1   :  { %v213_v50 = vmax.f32 %v183_v47, 0.0 }
  0xd6   :  { %v184_v48 = vpop.f32.mrf.mxu0 }
  0xd7   :  { %v185_v49 = vadd.f32 %v726_v25, %v184_v48 }
  0xd9   :  { %v214_v51 = vmax.f32 %v185_v49, 0.0  ;;  %v725_v49 = vld [vmem:[%s959_s5 + $0x38] sm:$0xff] }
  0xda   :  { %497 = vmatpush.bf16.msra.mxu3 %v725_v49 }
  0xdb   :  { %v226_v52 = vpack.c.bf16 %v214_v51, %v213_v50  ;;  %v724_v50 = vld [vmem:[%s959_s5 + $0x30] sm:$0xff]  ;;  %v727_v51 = vld [vmem:[%s958_s4] ss:$0 sm:$0xff] }
  0xdd   :  { %318 = vmatmul.bf16.gmra.mxu1 %v226_v52 }
  0xde   :  { %v187_v53 = vpop.f32.mrf.mxu0  ;;  %498 = vmatpush.bf16.msra.mxu3 %v724_v50  ;;  %v728_v50 = vld [vmem:[%s960_s6] ss:$0 sm:$0xff] }
  0xdf   :  { %v188_v54 = vadd.f32 %v726_v25, %v187_v53 }
  0xe1   :  { %v215_v57 = vmax.f32 %v188_v54, 0.0 }
  0xe6   :  { %v189_v55 = vpop.f32.mrf.mxu0 }
  0xe7   :  { %v190_v56 = vadd.f32 %v726_v25, %v189_v55 }
  0xe9   :  { %v216_v58 = vmax.f32 %v190_v56, 0.0 }
  0xeb   :  { %v227_v59 = vpack.c.bf16 %v216_v58, %v215_v57 }
  0xed   :  { %323 = vmatmul.bf16.gmra.mxu1 %v227_v59 }
  0xee   :  { %v192_v60 = vpop.f32.mrf.mxu0 }
  0xef   :  { %v193_v61 = vadd.f32 %v726_v25, %v192_v60 }
  0xf1   :  { %v217_v0 = vmax.f32 %v193_v61, 0.0 }
  0xf6   :  { %v194_v62 = vpop.f32.mrf.mxu0 }
  0xf7   :  { %v195_v63 = vadd.f32 %v726_v25, %v194_v62 }
  0xf9   :  { %v218_v1 = vmax.f32 %v195_v63, 0.0 }
  0xfb   :  { %v228_v2 = vpack.c.bf16 %v218_v1, %v217_v0 }
  0xfd   :  { %328 = vmatmul.bf16.gmra.mxu1 %v228_v2 }
  0xfe   :  { %v197_v3 = vpop.f32.mrf.mxu0 }
  0xff   :  { %v198_v4 = vadd.f32 %v726_v25, %v197_v3 }
 0x101   :  { %v219_v7 = vmax.f32 %v198_v4, 0.0 }
 0x106   :  { %v199_v5 = vpop.f32.mrf.mxu0 }
 0x107   :  { %v200_v6 = vadd.f32 %v726_v25, %v199_v5 }
 0x109   :  { %v220_v13 = vmax.f32 %v200_v6, 0.0 }
 0x10b   :  { %v229_v15 = vpack.c.bf16 %v220_v13, %v219_v7 }
 0x10d   :  { %333 = vmatmul.bf16.gmra.mxu1 %v229_v15 }
 0x10e   :  { %v202_v16 = vpop.f32.mrf.mxu0 }
 0x10f   :  { %v203_v17 = vadd.f32 %v726_v25, %v202_v16 }
 0x111   :  { %v221_v21 = vmax.f32 %v203_v17, 0.0 }
 0x116   :  { %v204_v18 = vpop.f32.mrf.mxu0 }
 0x117   :  { %v205_v20 = vadd.f32 %v726_v25, %v204_v18 }
 0x119   :  { %v222_v22 = vmax.f32 %v205_v20, 0.0 }
 0x11b   :  { %v230_v24 = vpack.c.bf16 %v222_v22, %v221_v21 }
 0x11d   :  { %338 = vmatmul.bf16.gmra.mxu1 %v230_v24 }
 0x12a   :  { %v304_v26 = vpop.f32.mrf.mxu1 }
 0x132   :  { %v306_v27 = vpop.f32.mrf.mxu1 }
 0x133   :  { %v344_v28 = vpack.c.bf16 %v306_v27, %v304_v26 }
 0x13a   :  { %v309_v29 = vpop.f32.mrf.mxu1 }
 0x142   :  { %v311_v30 = vpop.f32.mrf.mxu1 }
 0x143   :  { %v345_v31 = vpack.c.bf16 %v311_v30, %v309_v29 }
 0x14a   :  { %v314_v32 = vpop.f32.mrf.mxu1 }
 0x152   :  { %v316_v33 = vpop.f32.mrf.mxu1 }
 0x153   :  { %v346_v34 = vpack.c.bf16 %v316_v33, %v314_v32 }
 0x15a   :  { %v319_v35 = vpop.f32.mrf.mxu1 }
 0x162   :  { %v321_v36 = vpop.f32.mrf.mxu1 }
 0x163   :  { %v347_v37 = vpack.c.bf16 %v321_v36, %v319_v35 }
 0x16a   :  { %v324_v38 = vpop.f32.mrf.mxu1 }
 0x172   :  { %v326_v39 = vpop.f32.mrf.mxu1 }
 0x173   :  { %v348_v48 = vpack.c.bf16 %v326_v39, %v324_v38 }
 0x17a   :  { %v329_v40 = vpop.f32.mrf.mxu1 }
 0x182   :  { %v331_v25 = vpop.f32.mrf.mxu1 }
 0x183   :  { %v349_v47 = vpack.c.bf16 %v331_v25, %v329_v40 }
 0x18a   :  { %v334_v41 = vpop.f32.mrf.mxu1 }
 0x192   :  { %v336_v42 = vpop.f32.mrf.mxu1 }
 0x193   :  { %v350_v46 = vpack.c.bf16 %v336_v42, %v334_v41 }
 0x19a   :  { %v339_v43 = vpop.f32.mrf.mxu1 }
 0x1a2   :  { %v341_v44 = vpop.f32.mrf.mxu1 }
 0x1a3   :  { %v351_v45 = vpack.c.bf16 %v341_v44, %v339_v43 }
 0x1a5   :  { %356 = vmatpush.bf16.msra.mxu2 %v351_v45 }
 0x1a9   :  { %357 = vmatpush.bf16.msra.mxu2 %v350_v46 }
 0x1ad   :  { %358 = vmatpush.bf16.msra.mxu2 %v349_v47 }
 0x1b1   :  { %359 = vmatpush.bf16.msra.mxu2 %v348_v48 }
 0x1b5   :  { %360 = vmatpush.bf16.msra.mxu2 %v347_v37 }
 0x1b9   :  { %361 = vmatpush.bf16.msra.mxu2 %v346_v34 }
 0x1bd   :  { %362 = vmatpush.bf16.msra.mxu2 %v345_v31 }
 0x1c1   :  { %363 = vmatpush.bf16.msra.mxu2 %v344_v28 }
 0x1c4   :  { %364 = vmatmul.bf16.vlgmr.msra.gmra.mxu2 %v796_v8  ;;  %v723_v8 = vld [vmem:[%s959_s5 + $0x28] sm:$0xff] }
 0x1c5   :  { %499 = vmatpush.bf16.msra.mxu3 %v723_v8 }
 0x1d4   :  { %369 = vmatmul.bf16.gmra.mxu2 %v802_v9  ;;  %v722_v9 = vld [vmem:[%s959_s5 + $0x20] sm:$0xff] }
 0x1d5   :  { %500 = vmatpush.bf16.msra.mxu3 %v722_v9 }
 0x1e4   :  { %374 = vmatmul.bf16.gmra.mxu2 %v808_v10  ;;  %v721_v10 = vld [vmem:[%s959_s5 + $0x18] sm:$0xff] }
 0x1e5   :  { %501 = vmatpush.bf16.msra.mxu3 %v721_v10 }
 0x1f4   :  { %379 = vmatmul.bf16.gmra.mxu2 %v814_v11  ;;  %v720_v11 = vld [vmem:[%s959_s5 + $0x10] sm:$0xff] }
 0x1f5   :  { %502 = vmatpush.bf16.msra.mxu3 %v720_v11 }
 0x204   :  { %384 = vmatmul.bf16.gmra.mxu2 %v820_v12  ;;  %v719_v12 = vld [vmem:[%s959_s5 + $0x8] sm:$0xff] }
 0x205   :  { %503 = vmatpush.bf16.msra.mxu3 %v719_v12 }
 0x214   :  { %389 = vmatmul.bf16.gmra.mxu2 %v829_v14  ;;  %v718_v14 = vld [vmem:[%s959_s5] sm:$0xff] }
 0x215   :  { %504 = vmatpush.bf16.msra.mxu3 %v718_v14 }
 0x224   :  { %394 = vmatmul.bf16.gmra.mxu2 %v847_v19 }
 0x234   :  { %399 = vmatmul.bf16.gmra.mxu2 %v862_v23 }
 0x247   :  { %v365_v19 = vpop.f32.mrf.mxu2 }
 0x248   :  { %v366_v52 = vadd.f32 %v727_v51, %v365_v19 }
 0x24a   :  { %v405_v55 = vmax.f32 %v366_v52, 0.0 }
 0x24f   :  { %v367_v53 = vpop.f32.mrf.mxu2 }
 0x250   :  { %v368_v54 = vadd.f32 %v727_v51, %v367_v53 }
 0x252   :  { %v406_v56 = vmax.f32 %v368_v54, 0.0 }
 0x254   :  { %v421_v57 = vpack.c.bf16 %v406_v56, %v405_v55 }
 0x256   :  { %505 = vmatmul.bf16.vlgmr.msra.gmra.mxu3 %v421_v57 }
 0x257   :  { %v370_v58 = vpop.f32.mrf.mxu2 }
 0x258   :  { %v371_v59 = vadd.f32 %v727_v51, %v370_v58 }
 0x25a   :  { %v407_v62 = vmax.f32 %v371_v59, 0.0 }
 0x25f   :  { %v372_v60 = vpop.f32.mrf.mxu2 }
 0x260   :  { %v373_v61 = vadd.f32 %v727_v51, %v372_v60 }
 0x262   :  { %v408_v63 = vmax.f32 %v373_v61, 0.0 }
 0x264   :  { %v422_v0 = vpack.c.bf16 %v408_v63, %v407_v62 }
 0x266   :  { %510 = vmatmul.bf16.gmra.mxu3 %v422_v0 }
 0x267   :  { %v375_v23 = vpop.f32.mrf.mxu2 }
 0x268   :  { %v376_v1 = vadd.f32 %v727_v51, %v375_v23 }
 0x26a   :  { %v409_v4 = vmax.f32 %v376_v1, 0.0 }
 0x26f   :  { %v377_v2 = vpop.f32.mrf.mxu2 }
 0x270   :  { %v378_v3 = vadd.f32 %v727_v51, %v377_v2 }
 0x272   :  { %v410_v5 = vmax.f32 %v378_v3, 0.0 }
 0x274   :  { %v423_v6 = vpack.c.bf16 %v410_v5, %v409_v4 }
 0x276   :  { %515 = vmatmul.bf16.gmra.mxu3 %v423_v6 }
 0x277   :  { %v380_v7 = vpop.f32.mrf.mxu2 }
 0x278   :  { %v381_v13 = vadd.f32 %v727_v51, %v380_v7 }
 0x27a   :  { %v411_v17 = vmax.f32 %v381_v13, 0.0 }
 0x27f   :  { %v382_v15 = vpop.f32.mrf.mxu2 }
 0x280   :  { %v383_v16 = vadd.f32 %v727_v51, %v382_v15 }
 0x282   :  { %v412_v18 = vmax.f32 %v383_v16, 0.0 }
 0x284   :  { %v424_v20 = vpack.c.bf16 %v412_v18, %v411_v17 }
 0x286   :  { %520 = vmatmul.bf16.gmra.mxu3 %v424_v20 }
 0x287   :  { %v385_v21 = vpop.f32.mrf.mxu2 }
 0x288   :  { %v386_v22 = vadd.f32 %v727_v51, %v385_v21 }
 0x28a   :  { %v413_v27 = vmax.f32 %v386_v22, 0.0 }
 0x28f   :  { %v387_v24 = vpop.f32.mrf.mxu2 }
 0x290   :  { %v388_v26 = vadd.f32 %v727_v51, %v387_v24 }
 0x292   :  { %v414_v28 = vmax.f32 %v388_v26, 0.0 }
 0x294   :  { %v425_v29 = vpack.c.bf16 %v414_v28, %v413_v27 }
 0x296   :  { %525 = vmatmul.bf16.gmra.mxu3 %v425_v29 }
 0x297   :  { %v390_v30 = vpop.f32.mrf.mxu2 }
 0x298   :  { %v391_v31 = vadd.f32 %v727_v51, %v390_v30 }
 0x29a   :  { %v415_v34 = vmax.f32 %v391_v31, 0.0 }
 0x29f   :  { %v392_v32 = vpop.f32.mrf.mxu2 }
 0x2a0   :  { %v393_v33 = vadd.f32 %v727_v51, %v392_v32 }
 0x2a2   :  { %v416_v35 = vmax.f32 %v393_v33, 0.0 }
 0x2a4   :  { %v426_v36 = vpack.c.bf16 %v416_v35, %v415_v34 }
 0x2a6   :  { %530 = vmatmul.bf16.gmra.mxu3 %v426_v36 }
 0x2a7   :  { %v395_v37 = vpop.f32.mrf.mxu2 }
 0x2a8   :  { %v396_v38 = vadd.f32 %v727_v51, %v395_v37 }
 0x2aa   :  { %v417_v25 = vmax.f32 %v396_v38, 0.0 }
 0x2af   :  { %v397_v39 = vpop.f32.mrf.mxu2 }
 0x2b0   :  { %v398_v40 = vadd.f32 %v727_v51, %v397_v39 }
 0x2b2   :  { %v418_v41 = vmax.f32 %v398_v40, 0.0 }
 0x2b4   :  { %v427_v42 = vpack.c.bf16 %v418_v41, %v417_v25 }
 0x2b6   :  { %535 = vmatmul.bf16.gmra.mxu3 %v427_v42 }
 0x2b7   :  { %v400_v43 = vpop.f32.mrf.mxu2 }
 0x2b8   :  { %v401_v44 = vadd.f32 %v727_v51, %v400_v43 }
 0x2ba   :  { %v419_v47 = vmax.f32 %v401_v44, 0.0 }
 0x2bf   :  { %v402_v45 = vpop.f32.mrf.mxu2 }
 0x2c0   :  { %v403_v46 = vadd.f32 %v727_v51, %v402_v45 }
 0x2c2   :  { %v420_v48 = vmax.f32 %v403_v46, 0.0 }
 0x2c4   :  { %v428_v49 = vpack.c.bf16 %v420_v48, %v419_v47 }
 0x2c6   :  { %540 = vmatmul.bf16.gmra.mxu3 %v428_v49 }
 0x2d9   :  { %v506_v8 = vpop.f32.mrf.mxu3 }
 0x2da   :  { %v507_v9 = vadd.f32 %v728_v50, %v506_v8 }
 0x2dc   :  { %546 = vst [vmem:[%s961_s7] sm:$0xff] %v507_v9 }
 0x2e1   :  { %v508_v10 = vpop.f32.mrf.mxu3 }
 0x2e2   :  { %v509_v11 = vadd.f32 %v728_v50, %v508_v10 }
 0x2e4   :  { %547 = vst [vmem:[%s961_s7 + $0x8] sm:$0xff] %v509_v11 }
 0x2e9   :  { %v511_v12 = vpop.f32.mrf.mxu3 }
 0x2ea   :  { %v512_v14 = vadd.f32 %v728_v50, %v511_v12 }
 0x2ec   :  { %548 = vst [vmem:[%s961_s7 + $0x10] sm:$0xff] %v512_v14 }
 0x2f1   :  { %v513_v19 = vpop.f32.mrf.mxu3 }
 0x2f2   :  { %v514_v51 = vadd.f32 %v728_v50, %v513_v19 }
 0x2f4   :  { %549 = vst [vmem:[%s961_s7 + $0x18] sm:$0xff] %v514_v51 }
 0x2f9   :  { %v516_v52 = vpop.f32.mrf.mxu3 }
 0x2fa   :  { %v517_v53 = vadd.f32 %v728_v50, %v516_v52 }
 0x2fc   :  { %550 = vst [vmem:[%s961_s7 + $0x20] sm:$0xff] %v517_v53 }
 0x301   :  { %v518_v54 = vpop.f32.mrf.mxu3 }
 0x302   :  { %v519_v55 = vadd.f32 %v728_v50, %v518_v54 }
 0x304   :  { %551 = vst [vmem:[%s961_s7 + $0x28] sm:$0xff] %v519_v55 }
 0x309   :  { %v521_v56 = vpop.f32.mrf.mxu3 }
 0x30a   :  { %v522_v57 = vadd.f32 %v728_v50, %v521_v56 }
 0x30c   :  { %552 = vst [vmem:[%s961_s7 + $0x30] sm:$0xff] %v522_v57 }
 0x311   :  { %v523_v58 = vpop.f32.mrf.mxu3 }
 0x312   :  { %v524_v59 = vadd.f32 %v728_v50, %v523_v58 }
 0x314   :  { %553 = vst [vmem:[%s961_s7 + $0x38] sm:$0xff] %v524_v59 }
 0x319   :  { %v526_v60 = vpop.f32.mrf.mxu3 }
 0x31a   :  { %v527_v61 = vadd.f32 %v728_v50, %v526_v60 }
 0x31c   :  { %554 = vst [vmem:[%s961_s7 + $0x40] sm:$0xff] %v527_v61 }
 0x321   :  { %v528_v62 = vpop.f32.mrf.mxu3 }
 0x322   :  { %v529_v63 = vadd.f32 %v728_v50, %v528_v62 }
 0x324   :  { %555 = vst [vmem:[%s961_s7 + $0x48] sm:$0xff] %v529_v63 }
 0x329   :  { %v531_v0 = vpop.f32.mrf.mxu3 }
 0x32a   :  { %v532_v23 = vadd.f32 %v728_v50, %v531_v0 }
 0x32c   :  { %556 = vst [vmem:[%s961_s7 + $0x50] sm:$0xff] %v532_v23 }
 0x331   :  { %v533_v1 = vpop.f32.mrf.mxu3 }
 0x332   :  { %v534_v2 = vadd.f32 %v728_v50, %v533_v1 }
 0x334   :  { %557 = vst [vmem:[%s961_s7 + $0x58] sm:$0xff] %v534_v2 }
 0x339   :  { %v536_v3 = vpop.f32.mrf.mxu3 }
 0x33a   :  { %v537_v4 = vadd.f32 %v728_v50, %v536_v3 }
 0x33c   :  { %558 = vst [vmem:[%s961_s7 + $0x60] sm:$0xff] %v537_v4 }
 0x341   :  { %v538_v5 = vpop.f32.mrf.mxu3 }
 0x342   :  { %v539_v6 = vadd.f32 %v728_v50, %v538_v5 }
 0x344   :  { %559 = vst [vmem:[%s961_s7 + $0x68] sm:$0xff] %v539_v6 }
 0x349   :  { %v541_v7 = vpop.f32.mrf.mxu3 }
 0x34a   :  { %v542_v13 = vadd.f32 %v728_v50, %v541_v7 }
 0x34c   :  { %560 = vst [vmem:[%s961_s7 + $0x70] sm:$0xff] %v542_v13 }
 0x351   :  { %v543_v15 = vpop.f32.mrf.mxu3 }
 0x352   :  { %v544_v16 = vadd.f32 %v728_v50, %v543_v15 }
 0x354   :  { %561 = vst [vmem:[%s961_s7 + $0x78] sm:$0xff] %v544_v16 }

</bundles_post_ra>
